<compile_context>
chip_gen: v6e
topology: v6e:2x2x1
jax: 0.10.0
libtpu: 0.0.40
codegen_flags: <defaults>
</compile_context>

<pallas_src>
import functools

import jax
import jax.numpy as jnp
from jax import lax
from jax.experimental import pallas as pl
from jax.experimental.pallas import tpu as pltpu

H = 16   # hidden size
F = 4    # GRU input size (= x_input feat + x_history feat after concat on dim=2)
OUT = 2  # fc output size
SUBLANE = 8


def gru_fc_kernel(x_ref, wih_ref, whh_ref, bgi_ref, bhn_ref, wfc_ref, bfc_ref,
                  o_ref, gir_scr, giz_scr, gin_scr, h_scr, *, seq_len, batch):
    """GRU recurrence + fc, everything resident in VMEM.

    x_ref:   (T*Bp, F)    f32  time-major, batch padded to sublane width
    wih_ref: (F, 3H)      f32  (PyTorch weight_ih_l0 transposed, gate order [r,z,n])
    whh_ref: (H, 3H)      f32  (PyTorch weight_hh_l0 transposed)
    bgi_ref: (1, 3H)      f32  b_ih + [b_hh_r, b_hh_z, 0]  (pre-folded)
    bhn_ref: (1, H)       f32  b_hh_n (must stay inside the r* term)
    wfc_ref: (H, OUT)     f32  (fc.weight transposed)
    bfc_ref: (1, OUT)     f32
    o_ref:   (T*Bp, OUT)  f32
    gir/giz/gin_scr: (T*Bp, H) f32 scratch  per-gate input projections
    h_scr:   (T*Bp, H)    f32 scratch  all hidden states
    """
    # ---- Prologue: one big input-projection matmul for all timesteps ----
    gi = jnp.dot(x_ref[...], wih_ref[...],
                 preferred_element_type=jnp.float32) + bgi_ref[...]     # (T*Bp, 3H)
    gir_scr[...] = gi[:, 0:H]
    giz_scr[...] = gi[:, H:2 * H]
    gin_scr[...] = gi[:, 2 * H:3 * H]

    whh = whh_ref[...]
    # Hoist the b_hh_n broadcast out of the loop (JAX does not CSE broadcasts in loops).
    bhn = jnp.broadcast_to(bhn_ref[...], (batch, H))

    # ---- Serial recurrence: only h @ W_hh + gate math per step ----
    def step(t, h):
        row = pl.multiple_of(t * batch, batch)                          # sublane-aligned
        gh = jnp.dot(h, whh, preferred_element_type=jnp.float32)        # (Bp, 3H)
        r = jax.nn.sigmoid(gir_scr[pl.ds(row, batch), :] + gh[:, 0:H])
        z = jax.nn.sigmoid(giz_scr[pl.ds(row, batch), :] + gh[:, H:2 * H])
        n = jnp.tanh(gin_scr[pl.ds(row, batch), :] + r * (gh[:, 2 * H:3 * H] + bhn))
        h_new = (1.0 - z) * n + z * h                                   # (Bp, H)
        h_scr[pl.ds(row, batch), :] = h_new
        return h_new

    h0 = jnp.zeros((batch, H), dtype=jnp.float32)
    # T is small/static -> fully unroll so the scheduler can overlap MXU/VPU/EUP.
    lax.fori_loop(0, seq_len, step, h0, unroll=True)

    # ---- Epilogue: one fc matmul over all timesteps + one bulk store ----
    o_ref[...] = (jnp.dot(h_scr[...], wfc_ref[...],
                          preferred_element_type=jnp.float32) + bfc_ref[...])


def prepare_kernel_params(params):
    """Transpose weights and pre-fold biases for the kernel."""
    w_ih, w_hh = params["w_ih"], params["w_hh"]      # (3H, F), (3H, H)
    b_ih, b_hh = params["b_ih"], params["b_hh"]      # (3H,), (3H,)
    b_gi = b_ih + b_hh.at[2 * H:].set(0.0)           # fold b_hh r,z into input proj
    return {
        "wih_t": w_ih.T,                             # (F, 3H)
        "whh_t": w_hh.T,                             # (H, 3H)
        "bgi": b_gi.reshape(1, 3 * H),
        "bhn": b_hh[2 * H:3 * H].reshape(1, H),
        "wfc_t": params["w_fc"].T,                   # (H, OUT)
        "bfc": params["b_fc"].reshape(1, OUT),
    }


def gru_sequence_model(x_input, x_history, params):
    """Matches GRUSequenceModel.forward: cat on dim=2 -> GRU -> Linear."""
    x = jnp.concatenate([x_input, x_history], axis=2).astype(jnp.float32)  # (B, T, F)
    B, T, feat = x.shape
    assert feat == F
    Bp = max(SUBLANE, ((B + SUBLANE - 1) // SUBLANE) * SUBLANE)  # pad to sublane width

    x_tm = jnp.transpose(x, (1, 0, 2))                           # (T, B, F)
    x_tm = jnp.pad(x_tm, ((0, 0), (0, Bp - B), (0, 0)))          # (T, Bp, F)
    x2 = x_tm.reshape(T * Bp, F)                                 # clean 2-D tile

    kp = prepare_kernel_params(params)

    out2 = pl.pallas_call(
        functools.partial(gru_fc_kernel, seq_len=T, batch=Bp),
        out_shape=jax.ShapeDtypeStruct((T * Bp, OUT), jnp.float32),
        in_specs=[pl.BlockSpec(memory_space=pltpu.MemorySpace.VMEM)] * 7,
        out_specs=pl.BlockSpec(memory_space=pltpu.MemorySpace.VMEM),
        scratch_shapes=[
            pltpu.VMEM((T * Bp, H), jnp.float32),   # gi_r
            pltpu.VMEM((T * Bp, H), jnp.float32),   # gi_z
            pltpu.VMEM((T * Bp, H), jnp.float32),   # gi_n
            pltpu.VMEM((T * Bp, H), jnp.float32),   # h_all
        ],
    )(x2, kp["wih_t"], kp["whh_t"], kp["bgi"], kp["bhn"], kp["wfc_t"], kp["bfc"])

    out = out2.reshape(T, Bp, OUT)[:, :B, :]                     # drop batch padding
    return jnp.transpose(out, (1, 0, 2))                         # (B, T, 2)


def init_params(key):
    """PyTorch-layout params, uniform(-1/sqrt(H), 1/sqrt(H)) like nn.GRU / nn.Linear."""
    k = 1.0 / jnp.sqrt(jnp.float32(H))
    keys = jax.random.split(key, 6)
    return {
        "w_ih": jax.random.uniform(keys[0], (3 * H, F), jnp.float32, -k, k),  # weight_ih_l0
        "w_hh": jax.random.uniform(keys[1], (3 * H, H), jnp.float32, -k, k),  # weight_hh_l0
        "b_ih": jax.random.uniform(keys[2], (3 * H,), jnp.float32, -k, k),    # bias_ih_l0
        "b_hh": jax.random.uniform(keys[3], (3 * H,), jnp.float32, -k, k),    # bias_hh_l0
        "w_fc": jax.random.uniform(keys[4], (OUT, H), jnp.float32, -k, k),    # fc.weight
        "b_fc": jax.random.uniform(keys[5], (OUT,), jnp.float32, -k, k),      # fc.bias
    }


def reference(x_input, x_history, params):
    """Pure-JAX reference of the PyTorch forward (raw, unfolded biases)."""
    x = jnp.concatenate([x_input, x_history], axis=2).astype(jnp.float32)  # (B, T, F)
    B, T, _ = x.shape
    wih_t, whh_t = params["w_ih"].T, params["w_hh"].T
    bih, bhh = params["b_ih"].reshape(1, -1), params["b_hh"].reshape(1, -1)

    def step(h, x_t):
        gi = x_t @ wih_t + bih
        gh = h @ whh_t + bhh
        r = jax.nn.sigmoid(gi[:, 0:H] + gh[:, 0:H])
        z = jax.nn.sigmoid(gi[:, H:2 * H] + gh[:, H:2 * H])
        n = jnp.tanh(gi[:, 2 * H:3 * H] + r * gh[:, 2 * H:3 * H])
        h_new = (1.0 - z) * n + z * h
        return h_new, h_new

    h0 = jnp.zeros((B, H), jnp.float32)
    _, hs = lax.scan(step, h0, jnp.transpose(x, (1, 0, 2)))        # (T, B, H)
    out = hs @ params["w_fc"].T + params["b_fc"].reshape(1, OUT)   # (T, B, 2)
    return jnp.transpose(out, (1, 0, 2))                           # (B, T, 2)


if __name__ == "__main__":
    key = jax.random.PRNGKey(0)
    k_in, k_hist, k_par = jax.random.split(key, 3)

    B, T = 2, 8
    # x_input and x_history each carry 2 features; concat on dim=2 gives input_size=4.
    x_input = jax.random.normal(k_in, (B, T, 2), jnp.float32)
    x_history = jax.random.normal(k_hist, (B, T, 2), jnp.float32)

    params = init_params(k_par)

    out = gru_sequence_model(x_input, x_history, params)
    out = jax.block_until_ready(out)

    ref = reference(x_input, x_history, params)
    assert out.shape == (B, T, OUT)
    assert jnp.allclose(out, ref, atol=1e-5, rtol=1e-5), "mismatch vs reference"

    print("KERNEL_OK")
</pallas_src>

<mosaic_0001>
module attributes {stable_mosaic.version = 11 : i64} {
  func.func @gru_fc_kernel(%arg0: memref<64x4xf32, #tpu.memory_space<vmem>>, %arg1: memref<4x48xf32, #tpu.memory_space<vmem>>, %arg2: memref<16x48xf32, #tpu.memory_space<vmem>>, %arg3: memref<1x48xf32, #tpu.memory_space<vmem>>, %arg4: memref<1x16xf32, #tpu.memory_space<vmem>>, %arg5: memref<16x2xf32, #tpu.memory_space<vmem>>, %arg6: memref<1x2xf32, #tpu.memory_space<vmem>>, %arg7: memref<64x2xf32, #tpu.memory_space<vmem>>, %arg8: memref<64x16xf32, #tpu.memory_space<vmem>>, %arg9: memref<64x16xf32, #tpu.memory_space<vmem>>, %arg10: memref<64x16xf32, #tpu.memory_space<vmem>>, %arg11: memref<64x16xf32, #tpu.memory_space<vmem>>) attributes {dimension_semantics = [], scalar_prefetch = 0 : i64, scratch_operands = 4 : i64, tpu.core_type = #tpu.core_type<tc>} {
    %c0 = arith.constant 0 : index
    %c0_0 = arith.constant 0 : index
    %0 = vector.load %arg0[%c0, %c0_0] : memref<64x4xf32, #tpu.memory_space<vmem>>, vector<64x4xf32>
    %c0_1 = arith.constant 0 : index
    %c0_2 = arith.constant 0 : index
    %1 = vector.load %arg1[%c0_1, %c0_2] : memref<4x48xf32, #tpu.memory_space<vmem>>, vector<4x48xf32>
    %cst = arith.constant dense<0.000000e+00> : vector<64x48xf32>
    %2 = tpu.matmul %0, %1, %cst {dimension_numbers = #tpu.dot_dimension_numbers<[1], [0], [0], [1], [0, 0, 1, 1], [], []>} : vector<64x4xf32>, vector<4x48xf32>, vector<64x48xf32> -> vector<64x48xf32>
    %c0_3 = arith.constant 0 : index
    %c0_4 = arith.constant 0 : index
    %3 = vector.load %arg3[%c0_3, %c0_4] : memref<1x48xf32, #tpu.memory_space<vmem>>, vector<1x48xf32>
    %4 = vector.broadcast %3 : vector<1x48xf32> to vector<64x48xf32>
    %5 = arith.addf %2, %4 : vector<64x48xf32>
    %6 = vector.extract_strided_slice %5 {offsets = [0, 0], sizes = [64, 16], strides = [1, 1]} : vector<64x48xf32> to vector<64x16xf32>
    %c0_5 = arith.constant 0 : index
    %c0_6 = arith.constant 0 : index
    %7 = vector.load %arg8[%c0_5, %c0_6] : memref<64x16xf32, #tpu.memory_space<vmem>>, vector<64x16xf32>
    tpu.vector_store %arg8[%c0_5, %c0_6], %6 {strides = array<i32>} : memref<64x16xf32, #tpu.memory_space<vmem>>, vector<64x16xf32>,
    %8 = vector.extract_strided_slice %5 {offsets = [0, 16], sizes = [64, 16], strides = [1, 1]} : vector<64x48xf32> to vector<64x16xf32>
    %c0_7 = arith.constant 0 : index
    %c0_8 = arith.constant 0 : index
    %9 = vector.load %arg9[%c0_7, %c0_8] : memref<64x16xf32, #tpu.memory_space<vmem>>, vector<64x16xf32>
    tpu.vector_store %arg9[%c0_7, %c0_8], %8 {strides = array<i32>} : memref<64x16xf32, #tpu.memory_space<vmem>>, vector<64x16xf32>,
    %10 = vector.extract_strided_slice %5 {offsets = [0, 32], sizes = [64, 16], strides = [1, 1]} : vector<64x48xf32> to vector<64x16xf32>
    %c0_9 = arith.constant 0 : index
    %c0_10 = arith.constant 0 : index
    %11 = vector.load %arg10[%c0_9, %c0_10] : memref<64x16xf32, #tpu.memory_space<vmem>>, vector<64x16xf32>
    tpu.vector_store %arg10[%c0_9, %c0_10], %10 {strides = array<i32>} : memref<64x16xf32, #tpu.memory_space<vmem>>, vector<64x16xf32>,
    %c0_11 = arith.constant 0 : index
    %c0_12 = arith.constant 0 : index
    %12 = vector.load %arg2[%c0_11, %c0_12] : memref<16x48xf32, #tpu.memory_space<vmem>>, vector<16x48xf32>
    %c0_13 = arith.constant 0 : index
    %c0_14 = arith.constant 0 : index
    %13 = vector.load %arg4[%c0_13, %c0_14] : memref<1x16xf32, #tpu.memory_space<vmem>>, vector<1x16xf32>
    %14 = vector.shape_cast %13 : vector<1x16xf32> to vector<1x16xf32>
    %15 = vector.broadcast %14 : vector<1x16xf32> to vector<8x16xf32>
    %cst_15 = arith.constant 0.000000e+00 : f32
    %16 = vector.broadcast %cst_15 : f32 to vector<8x16xf32>
    %c0_i32 = arith.constant 0 : i32
    %c8_i32 = arith.constant 8 : i32
    %17 = arith.muli %c0_i32, %c8_i32 : i32
    %18 = tpu.assume_multiple %17, 8 : i32
    %cst_16 = arith.constant dense<0.000000e+00> : vector<8x48xf32>
    %19 = tpu.matmul %16, %12, %cst_16 {dimension_numbers = #tpu.dot_dimension_numbers<[1], [0], [0], [1], [0, 0, 1, 1], [], []>} : vector<8x16xf32>, vector<16x48xf32>, vector<8x48xf32> -> vector<8x48xf32>
    %20 = arith.index_cast %18 : i32 to index
    %c0_17 = arith.constant 0 : index
    %21 = vector.load %arg8[%20, %c0_17] : memref<64x16xf32, #tpu.memory_space<vmem>>, vector<8x16xf32>
    %22 = vector.extract_strided_slice %19 {offsets = [0, 0], sizes = [8, 16], strides = [1, 1]} : vector<8x48xf32> to vector<8x16xf32>
    %23 = arith.addf %21, %22 : vector<8x16xf32>
    %24 = arith.negf %23 : vector<8x16xf32>
    %25 = math.exp %24 : vector<8x16xf32>
    %cst_18 = arith.constant 1.000000e+00 : f32
    %26 = vector.broadcast %cst_18 : f32 to vector<8x16xf32>
    %27 = arith.addf %26, %25 : vector<8x16xf32>
    %28 = arith.divf %26, %27 : vector<8x16xf32>
    %29 = arith.index_cast %18 : i32 to index
    %c0_19 = arith.constant 0 : index
    %30 = vector.load %arg9[%29, %c0_19] : memref<64x16xf32, #tpu.memory_space<vmem>>, vector<8x16xf32>
    %31 = vector.extract_strided_slice %19 {offsets = [0, 16], sizes = [8, 16], strides = [1, 1]} : vector<8x48xf32> to vector<8x16xf32>
    %32 = arith.addf %30, %31 : vector<8x16xf32>
    %33 = arith.negf %32 : vector<8x16xf32>
    %34 = math.exp %33 : vector<8x16xf32>
    %cst_20 = arith.constant 1.000000e+00 : f32
    %35 = vector.broadcast %cst_20 : f32 to vector<8x16xf32>
    %36 = arith.addf %35, %34 : vector<8x16xf32>
    %37 = arith.divf %35, %36 : vector<8x16xf32>
    %38 = arith.index_cast %18 : i32 to index
    %c0_21 = arith.constant 0 : index
    %39 = vector.load %arg10[%38, %c0_21] : memref<64x16xf32, #tpu.memory_space<vmem>>, vector<8x16xf32>
    %40 = vector.extract_strided_slice %19 {offsets = [0, 32], sizes = [8, 16], strides = [1, 1]} : vector<8x48xf32> to vector<8x16xf32>
    %41 = arith.addf %40, %15 : vector<8x16xf32>
    %42 = arith.mulf %28, %41 : vector<8x16xf32>
    %43 = arith.addf %39, %42 : vector<8x16xf32>
    %44 = math.tanh %43 : vector<8x16xf32>
    %cst_22 = arith.constant 1.000000e+00 : f32
    %45 = vector.broadcast %cst_22 : f32 to vector<8x16xf32>
    %46 = arith.subf %45, %37 : vector<8x16xf32>
    %47 = arith.mulf %46, %44 : vector<8x16xf32>
    %48 = arith.mulf %37, %16 : vector<8x16xf32>
    %49 = arith.addf %47, %48 : vector<8x16xf32>
    %50 = arith.index_cast %18 : i32 to index
    %c0_23 = arith.constant 0 : index
    %51 = vector.load %arg11[%50, %c0_23] : memref<64x16xf32, #tpu.memory_space<vmem>>, vector<8x16xf32>
    tpu.vector_store %arg11[%50, %c0_23], %49 {strides = array<i32>} : memref<64x16xf32, #tpu.memory_space<vmem>>, vector<8x16xf32>,
    %c1_i32 = arith.constant 1 : i32
    %c8_i32_24 = arith.constant 8 : i32
    %52 = arith.muli %c1_i32, %c8_i32_24 : i32
    %53 = tpu.assume_multiple %52, 8 : i32
    %cst_25 = arith.constant dense<0.000000e+00> : vector<8x48xf32>
    %54 = tpu.matmul %49, %12, %cst_25 {dimension_numbers = #tpu.dot_dimension_numbers<[1], [0], [0], [1], [0, 0, 1, 1], [], []>} : vector<8x16xf32>, vector<16x48xf32>, vector<8x48xf32> -> vector<8x48xf32>
    %55 = arith.index_cast %53 : i32 to index
    %c0_26 = arith.constant 0 : index
    %56 = vector.load %arg8[%55, %c0_26] : memref<64x16xf32, #tpu.memory_space<vmem>>, vector<8x16xf32>
    %57 = vector.extract_strided_slice %54 {offsets = [0, 0], sizes = [8, 16], strides = [1, 1]} : vector<8x48xf32> to vector<8x16xf32>
    %58 = arith.addf %56, %57 : vector<8x16xf32>
    %59 = arith.negf %58 : vector<8x16xf32>
    %60 = math.exp %59 : vector<8x16xf32>
    %cst_27 = arith.constant 1.000000e+00 : f32
    %61 = vector.broadcast %cst_27 : f32 to vector<8x16xf32>
    %62 = arith.addf %61, %60 : vector<8x16xf32>
    %63 = arith.divf %61, %62 : vector<8x16xf32>
    %64 = arith.index_cast %53 : i32 to index
    %c0_28 = arith.constant 0 : index
    %65 = vector.load %arg9[%64, %c0_28] : memref<64x16xf32, #tpu.memory_space<vmem>>, vector<8x16xf32>
    %66 = vector.extract_strided_slice %54 {offsets = [0, 16], sizes = [8, 16], strides = [1, 1]} : vector<8x48xf32> to vector<8x16xf32>
    %67 = arith.addf %65, %66 : vector<8x16xf32>
    %68 = arith.negf %67 : vector<8x16xf32>
    %69 = math.exp %68 : vector<8x16xf32>
    %cst_29 = arith.constant 1.000000e+00 : f32
    %70 = vector.broadcast %cst_29 : f32 to vector<8x16xf32>
    %71 = arith.addf %70, %69 : vector<8x16xf32>
    %72 = arith.divf %70, %71 : vector<8x16xf32>
    %73 = arith.index_cast %53 : i32 to index
    %c0_30 = arith.constant 0 : index
    %74 = vector.load %arg10[%73, %c0_30] : memref<64x16xf32, #tpu.memory_space<vmem>>, vector<8x16xf32>
    %75 = vector.extract_strided_slice %54 {offsets = [0, 32], sizes = [8, 16], strides = [1, 1]} : vector<8x48xf32> to vector<8x16xf32>
    %76 = arith.addf %75, %15 : vector<8x16xf32>
    %77 = arith.mulf %63, %76 : vector<8x16xf32>
    %78 = arith.addf %74, %77 : vector<8x16xf32>
    %79 = math.tanh %78 : vector<8x16xf32>
    %cst_31 = arith.constant 1.000000e+00 : f32
    %80 = vector.broadcast %cst_31 : f32 to vector<8x16xf32>
    %81 = arith.subf %80, %72 : vector<8x16xf32>
    %82 = arith.mulf %81, %79 : vector<8x16xf32>
    %83 = arith.mulf %72, %49 : vector<8x16xf32>
    %84 = arith.addf %82, %83 : vector<8x16xf32>
    %85 = arith.index_cast %53 : i32 to index
    %c0_32 = arith.constant 0 : index
    %86 = vector.load %arg11[%85, %c0_32] : memref<64x16xf32, #tpu.memory_space<vmem>>, vector<8x16xf32>
    tpu.vector_store %arg11[%85, %c0_32], %84 {strides = array<i32>} : memref<64x16xf32, #tpu.memory_space<vmem>>, vector<8x16xf32>,
    %c2_i32 = arith.constant 2 : i32
    %c8_i32_33 = arith.constant 8 : i32
    %87 = arith.muli %c2_i32, %c8_i32_33 : i32
    %88 = tpu.assume_multiple %87, 8 : i32
    %cst_34 = arith.constant dense<0.000000e+00> : vector<8x48xf32>
    %89 = tpu.matmul %84, %12, %cst_34 {dimension_numbers = #tpu.dot_dimension_numbers<[1], [0], [0], [1], [0, 0, 1, 1], [], []>} : vector<8x16xf32>, vector<16x48xf32>, vector<8x48xf32> -> vector<8x48xf32>
    %90 = arith.index_cast %88 : i32 to index
    %c0_35 = arith.constant 0 : index
    %91 = vector.load %arg8[%90, %c0_35] : memref<64x16xf32, #tpu.memory_space<vmem>>, vector<8x16xf32>
    %92 = vector.extract_strided_slice %89 {offsets = [0, 0], sizes = [8, 16], strides = [1, 1]} : vector<8x48xf32> to vector<8x16xf32>
    %93 = arith.addf %91, %92 : vector<8x16xf32>
    %94 = arith.negf %93 : vector<8x16xf32>
    %95 = math.exp %94 : vector<8x16xf32>
    %cst_36 = arith.constant 1.000000e+00 : f32
    %96 = vector.broadcast %cst_36 : f32 to vector<8x16xf32>
    %97 = arith.addf %96, %95 : vector<8x16xf32>
    %98 = arith.divf %96, %97 : vector<8x16xf32>
    %99 = arith.index_cast %88 : i32 to index
    %c0_37 = arith.constant 0 : index
    %100 = vector.load %arg9[%99, %c0_37] : memref<64x16xf32, #tpu.memory_space<vmem>>, vector<8x16xf32>
    %101 = vector.extract_strided_slice %89 {offsets = [0, 16], sizes = [8, 16], strides = [1, 1]} : vector<8x48xf32> to vector<8x16xf32>
    %102 = arith.addf %100, %101 : vector<8x16xf32>
    %103 = arith.negf %102 : vector<8x16xf32>
    %104 = math.exp %103 : vector<8x16xf32>
    %cst_38 = arith.constant 1.000000e+00 : f32
    %105 = vector.broadcast %cst_38 : f32 to vector<8x16xf32>
    %106 = arith.addf %105, %104 : vector<8x16xf32>
    %107 = arith.divf %105, %106 : vector<8x16xf32>
    %108 = arith.index_cast %88 : i32 to index
    %c0_39 = arith.constant 0 : index
    %109 = vector.load %arg10[%108, %c0_39] : memref<64x16xf32, #tpu.memory_space<vmem>>, vector<8x16xf32>
    %110 = vector.extract_strided_slice %89 {offsets = [0, 32], sizes = [8, 16], strides = [1, 1]} : vector<8x48xf32> to vector<8x16xf32>
    %111 = arith.addf %110, %15 : vector<8x16xf32>
    %112 = arith.mulf %98, %111 : vector<8x16xf32>
    %113 = arith.addf %109, %112 : vector<8x16xf32>
    %114 = math.tanh %113 : vector<8x16xf32>
    %cst_40 = arith.constant 1.000000e+00 : f32
    %115 = vector.broadcast %cst_40 : f32 to vector<8x16xf32>
    %116 = arith.subf %115, %107 : vector<8x16xf32>
    %117 = arith.mulf %116, %114 : vector<8x16xf32>
    %118 = arith.mulf %107, %84 : vector<8x16xf32>
    %119 = arith.addf %117, %118 : vector<8x16xf32>
    %120 = arith.index_cast %88 : i32 to index
    %c0_41 = arith.constant 0 : index
    %121 = vector.load %arg11[%120, %c0_41] : memref<64x16xf32, #tpu.memory_space<vmem>>, vector<8x16xf32>
    tpu.vector_store %arg11[%120, %c0_41], %119 {strides = array<i32>} : memref<64x16xf32, #tpu.memory_space<vmem>>, vector<8x16xf32>,
    %c3_i32 = arith.constant 3 : i32
    %c8_i32_42 = arith.constant 8 : i32
    %122 = arith.muli %c3_i32, %c8_i32_42 : i32
    %123 = tpu.assume_multiple %122, 8 : i32
    %cst_43 = arith.constant dense<0.000000e+00> : vector<8x48xf32>
    %124 = tpu.matmul %119, %12, %cst_43 {dimension_numbers = #tpu.dot_dimension_numbers<[1], [0], [0], [1], [0, 0, 1, 1], [], []>} : vector<8x16xf32>, vector<16x48xf32>, vector<8x48xf32> -> vector<8x48xf32>
    %125 = arith.index_cast %123 : i32 to index
    %c0_44 = arith.constant 0 : index
    %126 = vector.load %arg8[%125, %c0_44] : memref<64x16xf32, #tpu.memory_space<vmem>>, vector<8x16xf32>
    %127 = vector.extract_strided_slice %124 {offsets = [0, 0], sizes = [8, 16], strides = [1, 1]} : vector<8x48xf32> to vector<8x16xf32>
    %128 = arith.addf %126, %127 : vector<8x16xf32>
    %129 = arith.negf %128 : vector<8x16xf32>
    %130 = math.exp %129 : vector<8x16xf32>
    %cst_45 = arith.constant 1.000000e+00 : f32
    %131 = vector.broadcast %cst_45 : f32 to vector<8x16xf32>
    %132 = arith.addf %131, %130 : vector<8x16xf32>
    %133 = arith.divf %131, %132 : vector<8x16xf32>
    %134 = arith.index_cast %123 : i32 to index
    %c0_46 = arith.constant 0 : index
    %135 = vector.load %arg9[%134, %c0_46] : memref<64x16xf32, #tpu.memory_space<vmem>>, vector<8x16xf32>
    %136 = vector.extract_strided_slice %124 {offsets = [0, 16], sizes = [8, 16], strides = [1, 1]} : vector<8x48xf32> to vector<8x16xf32>
    %137 = arith.addf %135, %136 : vector<8x16xf32>
    %138 = arith.negf %137 : vector<8x16xf32>
    %139 = math.exp %138 : vector<8x16xf32>
    %cst_47 = arith.constant 1.000000e+00 : f32
    %140 = vector.broadcast %cst_47 : f32 to vector<8x16xf32>
    %141 = arith.addf %140, %139 : vector<8x16xf32>
    %142 = arith.divf %140, %141 : vector<8x16xf32>
    %143 = arith.index_cast %123 : i32 to index
    %c0_48 = arith.constant 0 : index
    %144 = vector.load %arg10[%143, %c0_48] : memref<64x16xf32, #tpu.memory_space<vmem>>, vector<8x16xf32>
    %145 = vector.extract_strided_slice %124 {offsets = [0, 32], sizes = [8, 16], strides = [1, 1]} : vector<8x48xf32> to vector<8x16xf32>
    %146 = arith.addf %145, %15 : vector<8x16xf32>
    %147 = arith.mulf %133, %146 : vector<8x16xf32>
    %148 = arith.addf %144, %147 : vector<8x16xf32>
    %149 = math.tanh %148 : vector<8x16xf32>
    %cst_49 = arith.constant 1.000000e+00 : f32
    %150 = vector.broadcast %cst_49 : f32 to vector<8x16xf32>
    %151 = arith.subf %150, %142 : vector<8x16xf32>
    %152 = arith.mulf %151, %149 : vector<8x16xf32>
    %153 = arith.mulf %142, %119 : vector<8x16xf32>
    %154 = arith.addf %152, %153 : vector<8x16xf32>
    %155 = arith.index_cast %123 : i32 to index
    %c0_50 = arith.constant 0 : index
    %156 = vector.load %arg11[%155, %c0_50] : memref<64x16xf32, #tpu.memory_space<vmem>>, vector<8x16xf32>
    tpu.vector_store %arg11[%155, %c0_50], %154 {strides = array<i32>} : memref<64x16xf32, #tpu.memory_space<vmem>>, vector<8x16xf32>,
    %c4_i32 = arith.constant 4 : i32
    %c8_i32_51 = arith.constant 8 : i32
    %157 = arith.muli %c4_i32, %c8_i32_51 : i32
    %158 = tpu.assume_multiple %157, 8 : i32
    %cst_52 = arith.constant dense<0.000000e+00> : vector<8x48xf32>
    %159 = tpu.matmul %154, %12, %cst_52 {dimension_numbers = #tpu.dot_dimension_numbers<[1], [0], [0], [1], [0, 0, 1, 1], [], []>} : vector<8x16xf32>, vector<16x48xf32>, vector<8x48xf32> -> vector<8x48xf32>
    %160 = arith.index_cast %158 : i32 to index
    %c0_53 = arith.constant 0 : index
    %161 = vector.load %arg8[%160, %c0_53] : memref<64x16xf32, #tpu.memory_space<vmem>>, vector<8x16xf32>
    %162 = vector.extract_strided_slice %159 {offsets = [0, 0], sizes = [8, 16], strides = [1, 1]} : vector<8x48xf32> to vector<8x16xf32>
    %163 = arith.addf %161, %162 : vector<8x16xf32>
    %164 = arith.negf %163 : vector<8x16xf32>
    %165 = math.exp %164 : vector<8x16xf32>
    %cst_54 = arith.constant 1.000000e+00 : f32
    %166 = vector.broadcast %cst_54 : f32 to vector<8x16xf32>
    %167 = arith.addf %166, %165 : vector<8x16xf32>
    %168 = arith.divf %166, %167 : vector<8x16xf32>
    %169 = arith.index_cast %158 : i32 to index
    %c0_55 = arith.constant 0 : index
    %170 = vector.load %arg9[%169, %c0_55] : memref<64x16xf32, #tpu.memory_space<vmem>>, vector<8x16xf32>
    %171 = vector.extract_strided_slice %159 {offsets = [0, 16], sizes = [8, 16], strides = [1, 1]} : vector<8x48xf32> to vector<8x16xf32>
    %172 = arith.addf %170, %171 : vector<8x16xf32>
    %173 = arith.negf %172 : vector<8x16xf32>
    %174 = math.exp %173 : vector<8x16xf32>
    %cst_56 = arith.constant 1.000000e+00 : f32
    %175 = vector.broadcast %cst_56 : f32 to vector<8x16xf32>
    %176 = arith.addf %175, %174 : vector<8x16xf32>
    %177 = arith.divf %175, %176 : vector<8x16xf32>
    %178 = arith.index_cast %158 : i32 to index
    %c0_57 = arith.constant 0 : index
    %179 = vector.load %arg10[%178, %c0_57] : memref<64x16xf32, #tpu.memory_space<vmem>>, vector<8x16xf32>
    %180 = vector.extract_strided_slice %159 {offsets = [0, 32], sizes = [8, 16], strides = [1, 1]} : vector<8x48xf32> to vector<8x16xf32>
    %181 = arith.addf %180, %15 : vector<8x16xf32>
    %182 = arith.mulf %168, %181 : vector<8x16xf32>
    %183 = arith.addf %179, %182 : vector<8x16xf32>
    %184 = math.tanh %183 : vector<8x16xf32>
    %cst_58 = arith.constant 1.000000e+00 : f32
    %185 = vector.broadcast %cst_58 : f32 to vector<8x16xf32>
    %186 = arith.subf %185, %177 : vector<8x16xf32>
    %187 = arith.mulf %186, %184 : vector<8x16xf32>
    %188 = arith.mulf %177, %154 : vector<8x16xf32>
    %189 = arith.addf %187, %188 : vector<8x16xf32>
    %190 = arith.index_cast %158 : i32 to index
    %c0_59 = arith.constant 0 : index
    %191 = vector.load %arg11[%190, %c0_59] : memref<64x16xf32, #tpu.memory_space<vmem>>, vector<8x16xf32>
    tpu.vector_store %arg11[%190, %c0_59], %189 {strides = array<i32>} : memref<64x16xf32, #tpu.memory_space<vmem>>, vector<8x16xf32>,
    %c5_i32 = arith.constant 5 : i32
    %c8_i32_60 = arith.constant 8 : i32
    %192 = arith.muli %c5_i32, %c8_i32_60 : i32
    %193 = tpu.assume_multiple %192, 8 : i32
    %cst_61 = arith.constant dense<0.000000e+00> : vector<8x48xf32>
    %194 = tpu.matmul %189, %12, %cst_61 {dimension_numbers = #tpu.dot_dimension_numbers<[1], [0], [0], [1], [0, 0, 1, 1], [], []>} : vector<8x16xf32>, vector<16x48xf32>, vector<8x48xf32> -> vector<8x48xf32>
    %195 = arith.index_cast %193 : i32 to index
    %c0_62 = arith.constant 0 : index
    %196 = vector.load %arg8[%195, %c0_62] : memref<64x16xf32, #tpu.memory_space<vmem>>, vector<8x16xf32>
    %197 = vector.extract_strided_slice %194 {offsets = [0, 0], sizes = [8, 16], strides = [1, 1]} : vector<8x48xf32> to vector<8x16xf32>
    %198 = arith.addf %196, %197 : vector<8x16xf32>
    %199 = arith.negf %198 : vector<8x16xf32>
    %200 = math.exp %199 : vector<8x16xf32>
    %cst_63 = arith.constant 1.000000e+00 : f32
    %201 = vector.broadcast %cst_63 : f32 to vector<8x16xf32>
    %202 = arith.addf %201, %200 : vector<8x16xf32>
    %203 = arith.divf %201, %202 : vector<8x16xf32>
    %204 = arith.index_cast %193 : i32 to index
    %c0_64 = arith.constant 0 : index
    %205 = vector.load %arg9[%204, %c0_64] : memref<64x16xf32, #tpu.memory_space<vmem>>, vector<8x16xf32>
    %206 = vector.extract_strided_slice %194 {offsets = [0, 16], sizes = [8, 16], strides = [1, 1]} : vector<8x48xf32> to vector<8x16xf32>
    %207 = arith.addf %205, %206 : vector<8x16xf32>
    %208 = arith.negf %207 : vector<8x16xf32>
    %209 = math.exp %208 : vector<8x16xf32>
    %cst_65 = arith.constant 1.000000e+00 : f32
    %210 = vector.broadcast %cst_65 : f32 to vector<8x16xf32>
    %211 = arith.addf %210, %209 : vector<8x16xf32>
    %212 = arith.divf %210, %211 : vector<8x16xf32>
    %213 = arith.index_cast %193 : i32 to index
    %c0_66 = arith.constant 0 : index
    %214 = vector.load %arg10[%213, %c0_66] : memref<64x16xf32, #tpu.memory_space<vmem>>, vector<8x16xf32>
    %215 = vector.extract_strided_slice %194 {offsets = [0, 32], sizes = [8, 16], strides = [1, 1]} : vector<8x48xf32> to vector<8x16xf32>
    %216 = arith.addf %215, %15 : vector<8x16xf32>
    %217 = arith.mulf %203, %216 : vector<8x16xf32>
    %218 = arith.addf %214, %217 : vector<8x16xf32>
    %219 = math.tanh %218 : vector<8x16xf32>
    %cst_67 = arith.constant 1.000000e+00 : f32
    %220 = vector.broadcast %cst_67 : f32 to vector<8x16xf32>
    %221 = arith.subf %220, %212 : vector<8x16xf32>
    %222 = arith.mulf %221, %219 : vector<8x16xf32>
    %223 = arith.mulf %212, %189 : vector<8x16xf32>
    %224 = arith.addf %222, %223 : vector<8x16xf32>
    %225 = arith.index_cast %193 : i32 to index
    %c0_68 = arith.constant 0 : index
    %226 = vector.load %arg11[%225, %c0_68] : memref<64x16xf32, #tpu.memory_space<vmem>>, vector<8x16xf32>
    tpu.vector_store %arg11[%225, %c0_68], %224 {strides = array<i32>} : memref<64x16xf32, #tpu.memory_space<vmem>>, vector<8x16xf32>,
    %c6_i32 = arith.constant 6 : i32
    %c8_i32_69 = arith.constant 8 : i32
    %227 = arith.muli %c6_i32, %c8_i32_69 : i32
    %228 = tpu.assume_multiple %227, 8 : i32
    %cst_70 = arith.constant dense<0.000000e+00> : vector<8x48xf32>
    %229 = tpu.matmul %224, %12, %cst_70 {dimension_numbers = #tpu.dot_dimension_numbers<[1], [0], [0], [1], [0, 0, 1, 1], [], []>} : vector<8x16xf32>, vector<16x48xf32>, vector<8x48xf32> -> vector<8x48xf32>
    %230 = arith.index_cast %228 : i32 to index
    %c0_71 = arith.constant 0 : index
    %231 = vector.load %arg8[%230, %c0_71] : memref<64x16xf32, #tpu.memory_space<vmem>>, vector<8x16xf32>
    %232 = vector.extract_strided_slice %229 {offsets = [0, 0], sizes = [8, 16], strides = [1, 1]} : vector<8x48xf32> to vector<8x16xf32>
    %233 = arith.addf %231, %232 : vector<8x16xf32>
    %234 = arith.negf %233 : vector<8x16xf32>
    %235 = math.exp %234 : vector<8x16xf32>
    %cst_72 = arith.constant 1.000000e+00 : f32
    %236 = vector.broadcast %cst_72 : f32 to vector<8x16xf32>
    %237 = arith.addf %236, %235 : vector<8x16xf32>
    %238 = arith.divf %236, %237 : vector<8x16xf32>
    %239 = arith.index_cast %228 : i32 to index
    %c0_73 = arith.constant 0 : index
    %240 = vector.load %arg9[%239, %c0_73] : memref<64x16xf32, #tpu.memory_space<vmem>>, vector<8x16xf32>
    %241 = vector.extract_strided_slice %229 {offsets = [0, 16], sizes = [8, 16], strides = [1, 1]} : vector<8x48xf32> to vector<8x16xf32>
    %242 = arith.addf %240, %241 : vector<8x16xf32>
    %243 = arith.negf %242 : vector<8x16xf32>
    %244 = math.exp %243 : vector<8x16xf32>
    %cst_74 = arith.constant 1.000000e+00 : f32
    %245 = vector.broadcast %cst_74 : f32 to vector<8x16xf32>
    %246 = arith.addf %245, %244 : vector<8x16xf32>
    %247 = arith.divf %245, %246 : vector<8x16xf32>
    %248 = arith.index_cast %228 : i32 to index
    %c0_75 = arith.constant 0 : index
    %249 = vector.load %arg10[%248, %c0_75] : memref<64x16xf32, #tpu.memory_space<vmem>>, vector<8x16xf32>
    %250 = vector.extract_strided_slice %229 {offsets = [0, 32], sizes = [8, 16], strides = [1, 1]} : vector<8x48xf32> to vector<8x16xf32>
    %251 = arith.addf %250, %15 : vector<8x16xf32>
    %252 = arith.mulf %238, %251 : vector<8x16xf32>
    %253 = arith.addf %249, %252 : vector<8x16xf32>
    %254 = math.tanh %253 : vector<8x16xf32>
    %cst_76 = arith.constant 1.000000e+00 : f32
    %255 = vector.broadcast %cst_76 : f32 to vector<8x16xf32>
    %256 = arith.subf %255, %247 : vector<8x16xf32>
    %257 = arith.mulf %256, %254 : vector<8x16xf32>
    %258 = arith.mulf %247, %224 : vector<8x16xf32>
    %259 = arith.addf %257, %258 : vector<8x16xf32>
    %260 = arith.index_cast %228 : i32 to index
    %c0_77 = arith.constant 0 : index
    %261 = vector.load %arg11[%260, %c0_77] : memref<64x16xf32, #tpu.memory_space<vmem>>, vector<8x16xf32>
    tpu.vector_store %arg11[%260, %c0_77], %259 {strides = array<i32>} : memref<64x16xf32, #tpu.memory_space<vmem>>, vector<8x16xf32>,
    %c7_i32 = arith.constant 7 : i32
    %c8_i32_78 = arith.constant 8 : i32
    %262 = arith.muli %c7_i32, %c8_i32_78 : i32
    %263 = tpu.assume_multiple %262, 8 : i32
    %cst_79 = arith.constant dense<0.000000e+00> : vector<8x48xf32>
    %264 = tpu.matmul %259, %12, %cst_79 {dimension_numbers = #tpu.dot_dimension_numbers<[1], [0], [0], [1], [0, 0, 1, 1], [], []>} : vector<8x16xf32>, vector<16x48xf32>, vector<8x48xf32> -> vector<8x48xf32>
    %265 = arith.index_cast %263 : i32 to index
    %c0_80 = arith.constant 0 : index
    %266 = vector.load %arg8[%265, %c0_80] : memref<64x16xf32, #tpu.memory_space<vmem>>, vector<8x16xf32>
    %267 = vector.extract_strided_slice %264 {offsets = [0, 0], sizes = [8, 16], strides = [1, 1]} : vector<8x48xf32> to vector<8x16xf32>
    %268 = arith.addf %266, %267 : vector<8x16xf32>
    %269 = arith.negf %268 : vector<8x16xf32>
    %270 = math.exp %269 : vector<8x16xf32>
    %cst_81 = arith.constant 1.000000e+00 : f32
    %271 = vector.broadcast %cst_81 : f32 to vector<8x16xf32>
    %272 = arith.addf %271, %270 : vector<8x16xf32>
    %273 = arith.divf %271, %272 : vector<8x16xf32>
    %274 = arith.index_cast %263 : i32 to index
    %c0_82 = arith.constant 0 : index
    %275 = vector.load %arg9[%274, %c0_82] : memref<64x16xf32, #tpu.memory_space<vmem>>, vector<8x16xf32>
    %276 = vector.extract_strided_slice %264 {offsets = [0, 16], sizes = [8, 16], strides = [1, 1]} : vector<8x48xf32> to vector<8x16xf32>
    %277 = arith.addf %275, %276 : vector<8x16xf32>
    %278 = arith.negf %277 : vector<8x16xf32>
    %279 = math.exp %278 : vector<8x16xf32>
    %cst_83 = arith.constant 1.000000e+00 : f32
    %280 = vector.broadcast %cst_83 : f32 to vector<8x16xf32>
    %281 = arith.addf %280, %279 : vector<8x16xf32>
    %282 = arith.divf %280, %281 : vector<8x16xf32>
    %283 = arith.index_cast %263 : i32 to index
    %c0_84 = arith.constant 0 : index
    %284 = vector.load %arg10[%283, %c0_84] : memref<64x16xf32, #tpu.memory_space<vmem>>, vector<8x16xf32>
    %285 = vector.extract_strided_slice %264 {offsets = [0, 32], sizes = [8, 16], strides = [1, 1]} : vector<8x48xf32> to vector<8x16xf32>
    %286 = arith.addf %285, %15 : vector<8x16xf32>
    %287 = arith.mulf %273, %286 : vector<8x16xf32>
    %288 = arith.addf %284, %287 : vector<8x16xf32>
    %289 = math.tanh %288 : vector<8x16xf32>
    %cst_85 = arith.constant 1.000000e+00 : f32
    %290 = vector.broadcast %cst_85 : f32 to vector<8x16xf32>
    %291 = arith.subf %290, %282 : vector<8x16xf32>
    %292 = arith.mulf %291, %289 : vector<8x16xf32>
    %293 = arith.mulf %282, %259 : vector<8x16xf32>
    %294 = arith.addf %292, %293 : vector<8x16xf32>
    %295 = arith.index_cast %263 : i32 to index
    %c0_86 = arith.constant 0 : index
    %296 = vector.load %arg11[%295, %c0_86] : memref<64x16xf32, #tpu.memory_space<vmem>>, vector<8x16xf32>
    tpu.vector_store %arg11[%295, %c0_86], %294 {strides = array<i32>} : memref<64x16xf32, #tpu.memory_space<vmem>>, vector<8x16xf32>,
    %c8_i32_87 = arith.constant 8 : i32
    %c0_88 = arith.constant 0 : index
    %c0_89 = arith.constant 0 : index
    %297 = vector.load %arg11[%c0_88, %c0_89] : memref<64x16xf32, #tpu.memory_space<vmem>>, vector<64x16xf32>
    %c0_90 = arith.constant 0 : index
    %c0_91 = arith.constant 0 : index
    %298 = vector.load %arg5[%c0_90, %c0_91] : memref<16x2xf32, #tpu.memory_space<vmem>>, vector<16x2xf32>
    %cst_92 = arith.constant dense<0.000000e+00> : vector<64x2xf32>
    %299 = tpu.matmul %297, %298, %cst_92 {dimension_numbers = #tpu.dot_dimension_numbers<[1], [0], [0], [1], [0, 0, 1, 1], [], []>} : vector<64x16xf32>, vector<16x2xf32>, vector<64x2xf32> -> vector<64x2xf32>
    %c0_93 = arith.constant 0 : index
    %c0_94 = arith.constant 0 : index
    %300 = vector.load %arg6[%c0_93, %c0_94] : memref<1x2xf32, #tpu.memory_space<vmem>>, vector<1x2xf32>
    %301 = vector.broadcast %300 : vector<1x2xf32> to vector<64x2xf32>
    %302 = arith.addf %299, %301 : vector<64x2xf32>
    %c0_95 = arith.constant 0 : index
    %c0_96 = arith.constant 0 : index
    %303 = vector.load %arg7[%c0_95, %c0_96] : memref<64x2xf32, #tpu.memory_space<vmem>>, vector<64x2xf32>
    tpu.vector_store %arg7[%c0_95, %c0_96], %302 {strides = array<i32>} : memref<64x2xf32, #tpu.memory_space<vmem>>, vector<64x2xf32>,
    return
  }
}

</mosaic_0001>

<bundles_post_ra>
// kernel: tpu_custom_call.1
= control target key start
LH: loop header
LB: loop body
LE: loop exit
PB: predicated region body
PF: predicated region fallthrough
CT: control target
= control target key end

     0   :  { %vm67_vm0 = vcmask 1043456   ;;  %vm42_vm1 = vcmask 31744   ;;  %v1570_v9 = vmov 0.0   ;;  %vm1572_vm2 = vmmov 0   ;;  %s1574_s24 = smov 96   ;;  %s1860_s1 = inlined_call_operand.vmem [shape: f32[4,48], index: 1, kind: input, shape index: {}]   ;;  %s1861_s0 = inlined_call_operand.vmem [shape: f32[64,4], index: 0, kind: input, shape index: {}]   ;;  %s1862_s2 = inlined_call_operand.vmem [shape: f32[16,48], index: 2, kind: input, shape index: {}]   ;;  %s1863_s4 = inlined_call_operand.vmem [shape: f32[1,16], index: 4, kind: input, shape index: {}]   ;;  %s1864_s3 = inlined_call_operand.vmem [shape: f32[1,48], index: 3, kind: input, shape index: {}]   ;;  %s1865_s5 = inlined_call_operand.vmem [shape: f32[16,2], index: 5, kind: input, shape index: {}]   ;;  %s1866_s6 = inlined_call_operand.vmem [shape: f32[1,2], index: 6, kind: input, shape index: {}]   ;;  %s1867_s7 = inlined_call_operand.vmem [shape: f32[64,2], index: 7, kind: output, shape index: {}]  }
   0x1   :  { %v34_v0 = vld [vmem:[%s1860_s1] sm:$0xf]  ;;  %v27_v3 = vld [vmem:[%s1861_s0 + $0x8] sm:$0xff]  ;;  %v32_v5 = vld [vmem:[%s1861_s0 + $0x30] sm:$0xff]  ;;  %vm176_vm3 = vcmask 130048   ;;  %vm1298_vm4 = vcmask 15360  }
   0x2   :  { %v26_v1 = vld [vmem:[%s1861_s0] sm:$0xff]  ;;  %1397 = vmatprep.subr.msk.mxu0 %vm67_vm0, %v34_v0  ;;  %1483 = vmatprep.subr.msk.mxu1 %vm67_vm0, %v34_v0  ;;  %v31_v4 = vld [vmem:[%s1861_s0 + $0x28] sm:$0xff]  ;;  %v28_v7 = vld [vmem:[%s1861_s0 + $0x10] sm:$0xff] }
   0x3   :  { %v30_v2 = vld [vmem:[%s1861_s0 + $0x20] sm:$0xff]  ;;  %1398 = vmatpush3.msk.msra.mxu0 %vm67_vm0, %v34_v0  ;;  %1484 = vmatpush3.msk.msra.mxu1 %vm67_vm0, %v34_v0  ;;  %v1638_v6 = vld [vmem:[%s1862_s2 + $0x8] sm:$0xff]  ;;  %v33_v10 = vld [vmem:[%s1861_s0 + $0x38] sm:$0xff] }
   0x4   :  { %1399 = vmatprep.mubr.msk.f32.mxu0 %vm42_vm1, %v26_v1  ;;  %1405 = vmatprep.mubr.msk.f32.mxu1 %vm42_vm1, %v30_v2  ;;  %v1321_v8 = vld [vmem:[%s1863_s4] ss:$0 sm:$0xff]  ;;  %v29_v11 = vld [vmem:[%s1861_s0 + $0x18] sm:$0xff]  ;;  %s1571_s4 = smov 32  }
   0x5   :  { %1400 = vmatmul.mubr.msk.f32.vlgmr.msra.gmra.mxu0 %vm42_vm1, %v27_v3  ;;  %1406 = vmatmul.mubr.msk.f32.vlgmr.msra.gmra.mxu1 %vm42_vm1, %v31_v4  ;;  %v1660_v12 = vld [vmem:[%s1862_s2] sm:$0xff] }
   0x6   :  { %1408 = vmatprep.mubr.msk.f32.mxu1 %vm42_vm1, %v32_v5  ;;  %1411 = vmatprep.subr.mxu1 %v1570_v9  ;;  %v1311_v13 = vld [vmem:[%s1864_s3] ss:$0 sm:$0xff]  ;;  %s1573_s3 = smov 112  }
   0x7   :  { %1412 = vmatpush3.msra.mxu1 %v1638_v6  ;;  %1402 = vmatprep.mubr.msk.f32.mxu0 %vm42_vm1, %v28_v7 }
   0x8   :  { %1413 = vmatprep.subr.mxu1 %v1570_v9  ;;  %359 = vrot.lane.b32.xlu0 %v1321_v8, %s1571_s4 }
   0x9   :  { %1409 = vmatmul.mubr.msk.f32.gmra.mxu1 %vm42_vm1, %v33_v10  ;;  %1403 = vmatmul.mubr.msk.f32.gmra.mxu0 %vm42_vm1, %v29_v11 }
   0xa   :  { %1414 = vmatpush3.msra.mxu1 %v1660_v12  ;;  %1415 = vmatprep.mubr.msk.f32.mxu1 %vm1572_vm2, %v1570_v9 }
   0xb   :  { %1418 = vmatprep.subr.mxu1 %v1570_v9  ;;  %1439 = vmatprep.subr.mxu0 %v1570_v9 }
   0xc   :  { %1440 = vmatpush3.msra.mxu0 %v1638_v6  ;;  %1443 = vmatprep.mubr.msk.f32.mxu0 %vm1572_vm2, %v1570_v9 }
   0xd   :  { %1416 = vmatmul.mubr.f32.vlgmr.msra.gmra.mxu1 %v1570_v9  ;;  %1441 = vmatprep.subr.mxu0 %v1570_v9 }
   0xe   :  { %1419 = vmatpush3.msra.mxu1 %v1638_v6  ;;  %1422 = vmatprep.mubr.msk.f32.mxu1 %vm1572_vm2, %v1570_v9 }
   0xf   :  { %1420 = vmatprep.subr.mxu1 %v1570_v9  ;;  %1442 = vmatpush3.msra.mxu0 %v1660_v12 }
  0x10   :  { %1421 = vmatpush3.msra.mxu1 %v1660_v12  ;;  %1453 = vmatprep.subr.mxu0 %v1570_v9 }
  0x11   :  { %1425 = vmatprep.subr.mxu1 %v1570_v9 }
  0x7a   :  { %v1692_v25 = vpop.permute.xlu0 %359 }
  0xc5   :  { %v1401_v14 = vpop.f32.mrf.mxu0  ;;  %v1407_v15 = vpop.f32.mrf.mxu1 }
  0xc6   :  { %v143_v16 = vadd.f32 %v1401_v14, %v1311_v13  ;;  %v163_v17 = vadd.f32 %v1407_v15, %v1311_v13 }
  0xc7   :  { %v137_v18 = vpop.f32.mrf.mxu0  ;;  %v157_v19 = vpop.f32.mrf.mxu1 }
  0xc8   :  { %178 = vst.msk [vmem:[#allocation2 + $0x8] sm:$0xff] %vm176_vm3, %v143_v16  ;;  %182 = vst.msk [vmem:[#allocation2 + $0x28] sm:$0xff] %vm176_vm3, %v163_v17  ;;  %v138_v20 = vadd.f32 %v1311_v13, %v137_v18  ;;  %v158_v21 = vadd.f32 %v1311_v13, %v157_v19 }
  0xc9   :  { %v1410_v22 = vpop.f32.mrf.mxu1  ;;  %v1404_v23 = vpop.f32.mrf.mxu0 }
  0xca   :  { %177 = vst.msk [vmem:[#allocation2] sm:$0xff] %vm176_vm3, %v138_v20  ;;  %181 = vst.msk [vmem:[#allocation2 + $0x20] sm:$0xff] %vm176_vm3, %v158_v21  ;;  %v173_v24 = vadd.f32 %v1410_v22, %v1311_v13  ;;  %193 = vrot.lane.b32.xlu0 %v138_v20, %s1573_s3  ;;  %v153_v26 = vadd.f32 %v1404_v23, %v1311_v13 }
  0xcb   :  { %v167_v27 = vpop.f32.mrf.mxu1  ;;  %v147_v28 = vpop.f32.mrf.mxu0 }
  0xcc   :  { %184 = vst.msk [vmem:[#allocation2 + $0x38] sm:$0xff] %vm176_vm3, %v173_v24  ;;  %v168_v29 = vadd.f32 %v1311_v13, %v167_v27  ;;  %180 = vst.msk [vmem:[#allocation2 + $0x18] sm:$0xff] %vm176_vm3, %v153_v26  ;;  %v148_v30 = vadd.f32 %v1311_v13, %v147_v28 }
  0xcd   :  { %v334_v31 = vpop.f32.mrf.mxu1 }
  0xce   :  { %183 = vst.msk [vmem:[#allocation2 + $0x30] sm:$0xff] %vm176_vm3, %v168_v29  ;;  %v362_v32 = vadd.f32 %v1692_v25, %v334_v31  ;;  %348 = vrot.lane.b32.xlu1 %v334_v31, %s1573_s3  ;;  %179 = vst.msk [vmem:[#allocation2 + $0x10] sm:$0xff] %vm176_vm3, %v148_v30 }
  0xcf   :  { %v1417_v33 = vpop.f32.mrf.mxu1  ;;  %v449_v14 = vld [vmem:[#allocation2 + $0x8] sm:$0xff] }
  0xd0   :  { %364 = vrot.lane.b32.xlu0 %v362_v32, %s1574_s24 }
  0xd1   :  { %v338_v34 = vld [vmem:[#allocation2] sm:$0xff] }
  0xd2   :  { %225 = vrot.lane.b32.xlu1 %v138_v20, %s1574_s24  ;;  %v339_v35 = vadd.f32 %v338_v34, %v334_v31 }
  0xd4   :  { %v1322_v36 = vmul.f32 -1.442695, %v339_v35 }
  0xd6   :  { %195 = vrot.lane.b32.xlu1 %v143_v16, %s1573_s3  ;;  %1490 = vpow2.f32 %v1322_v36 }
  0xda   :  { %227 = vrot.lane.b32.xlu1 %v143_v16, %s1574_s24 }
  0xde   :  { %197 = vrot.lane.b32.xlu1 %v148_v30, %s1573_s3 }
  0xe2   :  { %229 = vrot.lane.b32.xlu1 %v148_v30, %s1574_s24 }
  0xe3   :  { %v1491_v38 = vpop.eup %1490 }
  0xe4   :  { %v343_v40 = vadd.f32 1.0, %v1491_v38 }
  0xe6   :  { %199 = vrot.lane.b32.xlu1 %v153_v26, %s1573_s3  ;;  %1492 = vrcp.f32 %v343_v40  ;;  %v560_v40 = vld [vmem:[#allocation2 + $0x10] sm:$0xff] }
  0xea   :  { %231 = vrot.lane.b32.xlu1 %v153_v26, %s1574_s24 }
  0xee   :  { %201 = vrot.lane.b32.xlu1 %v158_v21, %s1573_s3 }
  0xf2   :  { %233 = vrot.lane.b32.xlu1 %v158_v21, %s1574_s24 }
  0xf3   :  { %v1493_v49 = vpop.eup %1492 }
  0xf6   :  { %203 = vrot.lane.b32.xlu1 %v163_v17, %s1573_s3 }
  0xfa   :  { %235 = vrot.lane.b32.xlu1 %v163_v17, %s1574_s24 }
  0xfe   :  { %205 = vrot.lane.b32.xlu1 %v168_v29, %s1573_s3 }
 0x102   :  { %237 = vrot.lane.b32.xlu1 %v168_v29, %s1574_s24 }
 0x106   :  { %207 = vrot.lane.b32.xlu1 %v173_v24, %s1573_s3 }
 0x10a   :  { %239 = vrot.lane.b32.xlu1 %v173_v24, %s1574_s24 }
 0x13c   :  { %v194_v37 = vpop.permute.xlu0 %193 }
 0x13d   :  { %217 = vst.msk [vmem:[#allocation3] sm:$0xff] %vm176_vm3, %v194_v37 }
 0x140   :  { %v349_v39 = vpop.permute.xlu1 %348 }
 0x142   :  { %v365_v48 = vpop.permute.xlu0 %364 }
 0x143   :  { %v367_v52 = vmul.f32 %v1493_v49, %v365_v48 }
 0x144   :  { %v346_v41 = vld [vmem:[#allocation3] sm:$0xff]  ;;  %v226_v42 = vpop.permute.xlu1 %225 }
 0x145   :  { %v351_v43 = vadd.f32 %v349_v39, %v346_v41  ;;  %249 = vst.msk [vmem:[#allocation4] sm:$0xff] %vm176_vm3, %v226_v42 }
 0x147   :  { %v1323_v44 = vmul.f32 -1.442695, %v351_v43 }
 0x148   :  { %v196_v45 = vpop.permute.xlu1 %195 }
 0x149   :  { %1494 = vpow2.f32 %v1323_v44  ;;  %218 = vst.msk [vmem:[#allocation3 + $0x8] sm:$0xff] %vm176_vm3, %v196_v45 }
 0x14c   :  { %v228_v46 = vpop.permute.xlu1 %227  ;;  %v358_v51 = vld [vmem:[#allocation4] sm:$0xff] }
 0x14d   :  { %250 = vst.msk [vmem:[#allocation4 + $0x8] sm:$0xff] %vm176_vm3, %v228_v46  ;;  %v368_v55 = vadd.f32 %v367_v52, %v358_v51 }
 0x150   :  { %v198_v47 = vpop.permute.xlu1 %197  ;;  %v458_v19 = vld [vmem:[#allocation3 + $0x8] sm:$0xff] }
 0x151   :  { %219 = vst.msk [vmem:[#allocation3 + $0x10] sm:$0xff] %vm176_vm3, %v198_v47 }
 0x154   :  { %v230_v50 = vpop.permute.xlu1 %229  ;;  %v471_v28 = vld [vmem:[#allocation4 + $0x8] sm:$0xff] }
 0x155   :  { %251 = vst.msk [vmem:[#allocation4 + $0x10] sm:$0xff] %vm176_vm3, %v230_v50 }
 0x156   :  { %v1495_v53 = vpop.eup %1494 }
 0x157   :  { %v355_v54 = vadd.f32 1.0, %v1495_v53 }
 0x158   :  { %v200_v56 = vpop.permute.xlu1 %199  ;;  %v569_v45 = vld [vmem:[#allocation3 + $0x10] sm:$0xff] }
 0x159   :  { %1496 = vrcp.f32 %v355_v54  ;;  %220 = vst.msk [vmem:[#allocation3 + $0x18] sm:$0xff] %vm176_vm3, %v200_v56 }
 0x15a   :  { %1498 = vtanh.f32 %v368_v55 }
 0x15c   :  { %v232_v57 = vpop.permute.xlu1 %231  ;;  %v582_v53 = vld [vmem:[#allocation4 + $0x10] sm:$0xff] }
 0x15d   :  { %252 = vst.msk [vmem:[#allocation4 + $0x18] sm:$0xff] %vm176_vm3, %v232_v57 }
 0x160   :  { %v202_v58 = vpop.permute.xlu1 %201 }
 0x161   :  { %221 = vst.msk [vmem:[#allocation3 + $0x20] sm:$0xff] %vm176_vm3, %v202_v58 }
 0x164   :  { %v234_v59 = vpop.permute.xlu1 %233 }
 0x165   :  { %253 = vst.msk [vmem:[#allocation4 + $0x20] sm:$0xff] %vm176_vm3, %v234_v59 }
 0x166   :  { %v1497_v60 = vpop.eup %1496 }
 0x167   :  { %v370_v61 = vsub.f32 1.0, %v1497_v60  ;;  %v1499_v62 = vpop.eup %1498  ;;  %v372_v1 = vmul.f32 0.0, %v1497_v60 }
 0x168   :  { %v204_v63 = vpop.permute.xlu1 %203 }
 0x169   :  { %222 = vst.msk [vmem:[#allocation3 + $0x28] sm:$0xff] %vm176_vm3, %v204_v63  ;;  %v371_v0 = vmul.f32 %v1499_v62, %v370_v61 }
 0x16b   :  { %v373_v2 = vadd.f32 %v372_v1, %v371_v0  ;;  %v671_v1 = vld [vmem:[#allocation2 + $0x18] sm:$0xff] }
 0x16c   :  { %v236_v3 = vpop.permute.xlu1 %235 }
 0x16d   :  { %254 = vst.msk [vmem:[#allocation4 + $0x28] sm:$0xff] %vm176_vm3, %v236_v3  ;;  %374 = vst.msk [vmem:[#allocation5] sm:$0xff] %vm176_vm3, %v373_v2  ;;  %1423 = vmatmul.mubr.msk.f32.vlgmr.msra.gmra.mxu1 %vm176_vm3, %v373_v2 }
 0x16e   :  { %1426 = vmatpush3.msra.mxu1 %v1638_v6  ;;  %1429 = vmatprep.mubr.msk.f32.mxu1 %vm1572_vm2, %v1570_v9 }
 0x16f   :  { %1427 = vmatprep.subr.mxu1 %v1570_v9 }
 0x170   :  { %v206_v4 = vpop.permute.xlu1 %205  ;;  %1428 = vmatpush3.msra.mxu1 %v1660_v12 }
 0x171   :  { %223 = vst.msk [vmem:[#allocation3 + $0x30] sm:$0xff] %vm176_vm3, %v206_v4  ;;  %1432 = vmatprep.subr.mxu1 %v1570_v9 }
 0x174   :  { %v238_v5 = vpop.permute.xlu1 %237 }
 0x175   :  { %255 = vst.msk [vmem:[#allocation4 + $0x30] sm:$0xff] %vm176_vm3, %v238_v5 }
 0x178   :  { %v208_v7 = vpop.permute.xlu1 %207 }
 0x179   :  { %224 = vst.msk [vmem:[#allocation3 + $0x38] sm:$0xff] %vm176_vm3, %v208_v7  ;;  %v680_v7 = vld [vmem:[#allocation3 + $0x18] sm:$0xff] }
 0x17c   :  { %v240_v8 = vpop.permute.xlu1 %239 }
 0x17d   :  { %256 = vst.msk [vmem:[#allocation4 + $0x38] sm:$0xff] %vm176_vm3, %v240_v8 }
 0x22d   :  { %v444_v10 = vpop.f32.mrf.mxu1 }
 0x22e   :  { %460 = vrot.lane.b32.xlu0 %v444_v10, %s1573_s3  ;;  %v472_v13 = vadd.f32 %v444_v10, %v1692_v25  ;;  %v450_v15 = vadd.f32 %v449_v14, %v444_v10 }
 0x22f   :  { %v1424_v11 = vpop.f32.mrf.mxu1 }
 0x230   :  { %v1325_v16 = vmul.f32 -1.442695, %v450_v15 }
 0x232   :  { %474 = vrot.lane.b32.xlu0 %v472_v13, %s1574_s24  ;;  %1500 = vpow2.f32 %v1325_v16 }
 0x23f   :  { %v1501_v17 = vpop.eup %1500 }
 0x240   :  { %v454_v18 = vadd.f32 1.0, %v1501_v17  ;;  %v693_v17 = vld [vmem:[#allocation4 + $0x18] sm:$0xff] }
 0x242   :  { %1502 = vrcp.f32 %v454_v18 }
 0x24f   :  { %v1503_v24 = vpop.eup %1502 }
 0x2a0   :  { %v461_v20 = vpop.permute.xlu0 %460 }
 0x2a1   :  { %v463_v21 = vadd.f32 %v461_v20, %v458_v19 }
 0x2a3   :  { %v1326_v22 = vmul.f32 -1.442695, %v463_v21 }
 0x2a4   :  { %v475_v23 = vpop.permute.xlu0 %474 }
 0x2a5   :  { %1504 = vpow2.f32 %v1326_v22  ;;  %v477_v26 = vmul.f32 %v1503_v24, %v475_v23 }
 0x2a7   :  { %v478_v30 = vadd.f32 %v477_v26, %v471_v28 }
 0x2b2   :  { %v1505_v27 = vpop.eup %1504 }
 0x2b3   :  { %v467_v29 = vadd.f32 1.0, %v1505_v27 }
 0x2b5   :  { %1506 = vrcp.f32 %v467_v29 }
 0x2b6   :  { %1508 = vtanh.f32 %v478_v30  ;;  %v782_v30 = vld [vmem:[#allocation2 + $0x20] sm:$0xff] }
 0x2c2   :  { %v1507_v31 = vpop.eup %1506 }
 0x2c3   :  { %v480_v32 = vsub.f32 1.0, %v1507_v31  ;;  %v1509_v33 = vpop.eup %1508  ;;  %v482_v35 = vmul.f32 %v1507_v31, %v373_v2 }
 0x2c5   :  { %v481_v34 = vmul.f32 %v1509_v33, %v480_v32 }
 0x2c7   :  { %v483_v36 = vadd.f32 %v482_v35, %v481_v34  ;;  %v791_v35 = vld [vmem:[#allocation3 + $0x20] sm:$0xff] }
 0x2c9   :  { %485 = vst.msk [vmem:[#allocation5 + $0x8] sm:$0xff] %vm176_vm3, %v483_v36  ;;  %1430 = vmatmul.mubr.msk.f32.vlgmr.msra.gmra.mxu1 %vm176_vm3, %v483_v36 }
 0x2ca   :  { %1433 = vmatpush3.msra.mxu1 %v1638_v6  ;;  %1436 = vmatprep.mubr.msk.f32.mxu1 %vm1572_vm2, %v1570_v9 }
 0x2cb   :  { %1434 = vmatprep.subr.mxu1 %v1570_v9 }
 0x2cc   :  { %1435 = vmatpush3.msra.mxu1 %v1660_v12 }
 0x2cd   :  { %1446 = vmatprep.subr.mxu1 %v1570_v9 }
 0x389   :  { %v555_v37 = vpop.f32.mrf.mxu1 }
 0x38a   :  { %571 = vrot.lane.b32.xlu0 %v555_v37, %s1573_s3  ;;  %v583_v39 = vadd.f32 %v555_v37, %v1692_v25  ;;  %v561_v41 = vadd.f32 %v560_v40, %v555_v37 }
 0x38b   :  { %v1431_v38 = vpop.f32.mrf.mxu1 }
 0x38c   :  { %v1328_v42 = vmul.f32 -1.442695, %v561_v41 }
 0x38e   :  { %585 = vrot.lane.b32.xlu0 %v583_v39, %s1574_s24  ;;  %1510 = vpow2.f32 %v1328_v42 }
 0x39b   :  { %v1511_v43 = vpop.eup %1510 }
 0x39c   :  { %v565_v44 = vadd.f32 1.0, %v1511_v43  ;;  %v804_v43 = vld [vmem:[#allocation4 + $0x20] sm:$0xff] }
 0x39e   :  { %1512 = vrcp.f32 %v565_v44 }
 0x3ab   :  { %v1513_v50 = vpop.eup %1512 }
 0x3fc   :  { %v572_v46 = vpop.permute.xlu0 %571 }
 0x3fd   :  { %v574_v47 = vadd.f32 %v572_v46, %v569_v45 }
 0x3ff   :  { %v1329_v48 = vmul.f32 -1.442695, %v574_v47 }
 0x400   :  { %v586_v49 = vpop.permute.xlu0 %585 }
 0x401   :  { %1514 = vpow2.f32 %v1329_v48  ;;  %v588_v51 = vmul.f32 %v1513_v50, %v586_v49 }
 0x403   :  { %v589_v55 = vadd.f32 %v588_v51, %v582_v53 }
 0x40e   :  { %v1515_v52 = vpop.eup %1514 }
 0x40f   :  { %v578_v54 = vadd.f32 1.0, %v1515_v52 }
 0x411   :  { %1516 = vrcp.f32 %v578_v54 }
 0x412   :  { %1518 = vtanh.f32 %v589_v55  ;;  %v1161_v55 = vld [vmem:[%s1865_s5 + $0x8] sm:$0xff] }
 0x41e   :  { %v1517_v56 = vpop.eup %1516 }
 0x41f   :  { %v591_v57 = vsub.f32 1.0, %v1517_v56  ;;  %v1519_v58 = vpop.eup %1518  ;;  %v593_v60 = vmul.f32 %v1517_v56, %v483_v36 }
 0x421   :  { %v592_v59 = vmul.f32 %v1519_v58, %v591_v57 }
 0x423   :  { %v594_v61 = vadd.f32 %v593_v60, %v592_v59 }
 0x425   :  { %596 = vst.msk [vmem:[#allocation5 + $0x10] sm:$0xff] %vm176_vm3, %v594_v61  ;;  %1437 = vmatmul.mubr.msk.f32.vlgmr.msra.gmra.mxu1 %vm176_vm3, %v594_v61 }
 0x426   :  { %1447 = vmatpush3.msra.mxu1 %v1638_v6  ;;  %1450 = vmatprep.mubr.msk.f32.mxu1 %vm1572_vm2, %v1570_v9 }
 0x427   :  { %1448 = vmatprep.subr.mxu1 %v1570_v9 }
 0x428   :  { %1449 = vmatpush3.msra.mxu1 %v1660_v12 }
 0x429   :  { %1460 = vmatprep.subr.mxu1 %v1570_v9 }
 0x4e5   :  { %v666_v62 = vpop.f32.mrf.mxu1 }
 0x4e6   :  { %682 = vrot.lane.b32.xlu0 %v666_v62, %s1573_s3  ;;  %v694_v0 = vadd.f32 %v666_v62, %v1692_v25  ;;  %v672_v2 = vadd.f32 %v671_v1, %v666_v62 }
 0x4e7   :  { %v1438_v63 = vpop.f32.mrf.mxu1 }
 0x4e8   :  { %v1331_v3 = vmul.f32 -1.442695, %v672_v2  ;;  %v915_v2 = vld [vmem:[#allocation4 + $0x28] sm:$0xff] }
 0x4ea   :  { %696 = vrot.lane.b32.xlu0 %v694_v0, %s1574_s24  ;;  %1520 = vpow2.f32 %v1331_v3 }
 0x4f7   :  { %v1521_v4 = vpop.eup %1520 }
 0x4f8   :  { %v676_v5 = vadd.f32 1.0, %v1521_v4 }
 0x4fa   :  { %1522 = vrcp.f32 %v676_v5 }
 0x507   :  { %v1523_v14 = vpop.eup %1522 }
 0x558   :  { %v683_v8 = vpop.permute.xlu0 %682 }
 0x559   :  { %v685_v10 = vadd.f32 %v683_v8, %v680_v7 }
 0x55b   :  { %v1332_v11 = vmul.f32 -1.442695, %v685_v10 }
 0x55c   :  { %v697_v13 = vpop.permute.xlu0 %696 }
 0x55d   :  { %1524 = vpow2.f32 %v1332_v11  ;;  %v699_v15 = vmul.f32 %v1523_v14, %v697_v13  ;;  %v1160_v14 = vld [vmem:[%s1865_s5] sm:$0xff] }
 0x55f   :  { %v700_v19 = vadd.f32 %v699_v15, %v693_v17  ;;  %v1152_v15 = vld [vmem:[#allocation5] sm:$0xff]  ;;  %v1154_v17 = vld [vmem:[#allocation5 + $0x10] sm:$0xff] }
 0x56a   :  { %v1525_v16 = vpop.eup %1524 }
 0x56b   :  { %v689_v18 = vadd.f32 1.0, %v1525_v16  ;;  %v1153_v16 = vld [vmem:[#allocation5 + $0x8] sm:$0xff] }
 0x56d   :  { %1526 = vrcp.f32 %v689_v18 }
 0x56e   :  { %1528 = vtanh.f32 %v700_v19 }
 0x57a   :  { %v1527_v20 = vpop.eup %1526 }
 0x57b   :  { %v702_v21 = vsub.f32 1.0, %v1527_v20  ;;  %v1529_v22 = vpop.eup %1528  ;;  %v704_v24 = vmul.f32 %v1527_v20, %v594_v61 }
 0x57d   :  { %v703_v23 = vmul.f32 %v1529_v22, %v702_v21 }
 0x57f   :  { %v705_v26 = vadd.f32 %v704_v24, %v703_v23  ;;  %v1807_v23 = vld [vmem:[%s1866_s6] ss:$0 sm:$0xff] }
 0x581   :  { %707 = vst.msk [vmem:[#allocation5 + $0x18] sm:$0xff] %vm176_vm3, %v705_v26  ;;  %1444 = vmatmul.mubr.msk.f32.vlgmr.msra.gmra.mxu0 %vm176_vm3, %v705_v26 }
 0x582   :  { %1454 = vmatpush3.msra.mxu0 %v1638_v6  ;;  %1457 = vmatprep.mubr.msk.f32.mxu0 %vm1572_vm2, %v1570_v9 }
 0x583   :  { %1455 = vmatprep.subr.mxu0 %v1570_v9 }
 0x584   :  { %1456 = vmatpush3.msra.mxu0 %v1660_v12 }
 0x585   :  { %1467 = vmatprep.subr.mxu0 %v1161_v55 }
 0x588   :  { %v1155_v18 = vld [vmem:[#allocation5 + $0x18] sm:$0xff] }
 0x641   :  { %v777_v27 = vpop.f32.mrf.mxu0 }
 0x642   :  { %793 = vrot.lane.b32.xlu0 %v777_v27, %s1573_s3  ;;  %v805_v29 = vadd.f32 %v777_v27, %v1692_v25  ;;  %v783_v31 = vadd.f32 %v782_v30, %v777_v27 }
 0x643   :  { %v1445_v28 = vpop.f32.mrf.mxu0 }
 0x644   :  { %v1334_v32 = vmul.f32 -1.442695, %v783_v31 }
 0x646   :  { %807 = vrot.lane.b32.xlu0 %v805_v29, %s1574_s24  ;;  %1530 = vpow2.f32 %v1334_v32 }
 0x653   :  { %v1531_v33 = vpop.eup %1530 }
 0x654   :  { %v787_v34 = vadd.f32 1.0, %v1531_v33 }
 0x656   :  { %1532 = vrcp.f32 %v787_v34 }
 0x663   :  { %v1533_v40 = vpop.eup %1532 }
 0x6b4   :  { %v794_v36 = vpop.permute.xlu0 %793 }
 0x6b5   :  { %v796_v37 = vadd.f32 %v794_v36, %v791_v35 }
 0x6b7   :  { %v1335_v38 = vmul.f32 -1.442695, %v796_v37 }
 0x6b8   :  { %v808_v39 = vpop.permute.xlu0 %807 }
 0x6b9   :  { %1534 = vpow2.f32 %v1335_v38  ;;  %v810_v41 = vmul.f32 %v1533_v40, %v808_v39  ;;  %v1004_v38 = vld [vmem:[#allocation2 + $0x30] sm:$0xff] }
 0x6bb   :  { %v811_v45 = vadd.f32 %v810_v41, %v804_v43  ;;  %v1013_v43 = vld [vmem:[#allocation3 + $0x30] sm:$0xff] }
 0x6c6   :  { %v1535_v42 = vpop.eup %1534 }
 0x6c7   :  { %v800_v44 = vadd.f32 1.0, %v1535_v42 }
 0x6c9   :  { %1536 = vrcp.f32 %v800_v44 }
 0x6ca   :  { %1538 = vtanh.f32 %v811_v45 }
 0x6d6   :  { %v1537_v46 = vpop.eup %1536 }
 0x6d7   :  { %v813_v47 = vsub.f32 1.0, %v1537_v46  ;;  %v1539_v48 = vpop.eup %1538  ;;  %v815_v50 = vmul.f32 %v1537_v46, %v705_v26 }
 0x6d9   :  { %v814_v49 = vmul.f32 %v1539_v48, %v813_v47 }
 0x6db   :  { %v816_v51 = vadd.f32 %v815_v50, %v814_v49 }
 0x6dd   :  { %818 = vst.msk [vmem:[#allocation5 + $0x20] sm:$0xff] %vm176_vm3, %v816_v51  ;;  %1451 = vmatmul.mubr.msk.f32.vlgmr.msra.gmra.mxu1 %vm176_vm3, %v816_v51 }
 0x6de   :  { %1461 = vmatpush3.msra.mxu1 %v1638_v6  ;;  %1464 = vmatprep.mubr.msk.f32.mxu1 %vm1572_vm2, %v1570_v9  ;;  %v893_v6 = vld [vmem:[#allocation2 + $0x28] sm:$0xff] }
 0x6df   :  { %1462 = vmatprep.subr.mxu1 %v1570_v9 }
 0x6e0   :  { %1463 = vmatpush3.msra.mxu1 %v1660_v12  ;;  %v902_v12 = vld [vmem:[#allocation3 + $0x28] sm:$0xff] }
 0x6e4   :  { %v1156_v19 = vld [vmem:[#allocation5 + $0x20] sm:$0xff] }
 0x79d   :  { %v888_v52 = vpop.f32.mrf.mxu1 }
 0x79e   :  { %904 = vrot.lane.b32.xlu0 %v888_v52, %s1573_s3  ;;  %v916_v54 = vadd.f32 %v888_v52, %v1692_v25  ;;  %v894_v56 = vadd.f32 %v893_v6, %v888_v52 }
 0x79f   :  { %v1452_v53 = vpop.f32.mrf.mxu1 }
 0x7a0   :  { %v1337_v57 = vmul.f32 -1.442695, %v894_v56 }
 0x7a2   :  { %918 = vrot.lane.b32.xlu0 %v916_v54, %s1574_s24  ;;  %1540 = vpow2.f32 %v1337_v57 }
 0x7af   :  { %v1541_v9 = vpop.eup %1540 }
 0x7b0   :  { %v898_v58 = vadd.f32 1.0, %v1541_v9 }
 0x7b2   :  { %1542 = vrcp.f32 %v898_v58 }
 0x7bf   :  { %v1543_v63 = vpop.eup %1542 }
 0x810   :  { %v905_v59 = vpop.permute.xlu0 %904 }
 0x811   :  { %v907_v60 = vadd.f32 %v905_v59, %v902_v12 }
 0x813   :  { %v1338_v61 = vmul.f32 -1.442695, %v907_v60 }
 0x814   :  { %v919_v62 = vpop.permute.xlu0 %918 }
 0x815   :  { %1544 = vpow2.f32 %v1338_v61  ;;  %v921_v0 = vmul.f32 %v1543_v63, %v919_v62  ;;  %v1115_v61 = vld [vmem:[#allocation2 + $0x38] sm:$0xff] }
 0x817   :  { %v922_v4 = vadd.f32 %v921_v0, %v915_v2  ;;  %v1124_v2 = vld [vmem:[#allocation3 + $0x38] sm:$0xff] }
 0x822   :  { %v1545_v1 = vpop.eup %1544 }
 0x823   :  { %v911_v3 = vadd.f32 1.0, %v1545_v1 }
 0x825   :  { %1546 = vrcp.f32 %v911_v3 }
 0x826   :  { %1548 = vtanh.f32 %v922_v4 }
 0x832   :  { %v1547_v5 = vpop.eup %1546 }
 0x833   :  { %v924_v7 = vsub.f32 1.0, %v1547_v5  ;;  %v1549_v8 = vpop.eup %1548  ;;  %v926_v11 = vmul.f32 %v1547_v5, %v816_v51  ;;  %v1026_v51 = vld [vmem:[#allocation4 + $0x30] sm:$0xff] }
 0x835   :  { %v925_v10 = vmul.f32 %v1549_v8, %v924_v7 }
 0x837   :  { %v1788_v13 = vadd.f32 %v926_v11, %v925_v10 }
 0x839   :  { %929 = vst.msk [vmem:[#allocation5 + $0x28] sm:$0xff] %vm176_vm3, %v1788_v13  ;;  %1458 = vmatmul.mubr.msk.f32.vlgmr.msra.gmra.mxu0 %vm176_vm3, %v1788_v13 }
 0x83a   :  { %1468 = vmatpush3.msra.mxu0 %v1161_v55  ;;  %1471 = vmatprep.mubr.msk.f32.mxu0 %vm176_vm3, %v1152_v15 }
 0x83b   :  { %1469 = vmatprep.subr.mxu0 %v1160_v14 }
 0x83c   :  { %1470 = vmatpush3.msra.mxu0 %v1160_v14 }
 0x83d   :  { %1472 = vmatmul.mubr.msk.f32.vlgmr.msra.gmra.mxu0 %vm176_vm3, %v1153_v16 }
 0x83e   :  { %1474 = vmatprep.mubr.msk.f32.mxu0 %vm176_vm3, %v1154_v17 }
 0x840   :  { %v1157_v20 = vld [vmem:[#allocation5 + $0x28] sm:$0xff] }
 0x841   :  { %1475 = vmatmul.mubr.msk.f32.gmra.mxu0 %vm176_vm3, %v1155_v18 }
 0x842   :  { %1477 = vmatprep.mubr.msk.f32.mxu0 %vm176_vm3, %v1156_v19 }
 0x845   :  { %1478 = vmatmul.mubr.msk.f32.gmra.mxu0 %vm176_vm3, %v1157_v20 }
 0x8f9   :  { %v999_v21 = vpop.f32.mrf.mxu0 }
 0x8fa   :  { %1015 = vrot.lane.b32.xlu0 %v999_v21, %s1573_s3  ;;  %v1027_v24 = vadd.f32 %v999_v21, %v1692_v25  ;;  %v1005_v39 = vadd.f32 %v1004_v38, %v999_v21 }
 0x8fb   :  { %v1459_v22 = vpop.f32.mrf.mxu0 }
 0x8fc   :  { %v1340_v40 = vmul.f32 -1.442695, %v1005_v39 }
 0x8fd   :  { %v1473_v26 = vpop.f32.mrf.mxu0 }
 0x8fe   :  { %v1265_v27 = vadd.f32 %v1473_v26, %v1807_v23  ;;  %1029 = vrot.lane.b32.xlu0 %v1027_v24, %s1574_s24  ;;  %1550 = vpow2.f32 %v1340_v40 }
 0x8ff   :  { %v1259_v28 = vpop.f32.mrf.mxu0 }
 0x900   :  { %1300 = vst.msk [vmem:[%s1867_s7 + $0x8] sm:$0xff] %vm1298_vm4, %v1265_v27  ;;  %v1260_v29 = vadd.f32 %v1807_v23, %v1259_v28 }
 0x901   :  { %v1476_v30 = vpop.f32.mrf.mxu0 }
 0x902   :  { %1299 = vst.msk [vmem:[%s1867_s7] sm:$0xff] %vm1298_vm4, %v1260_v29  ;;  %v1275_v31 = vadd.f32 %v1476_v30, %v1807_v23 }
 0x903   :  { %v1269_v32 = vpop.f32.mrf.mxu0 }
 0x904   :  { %1302 = vst.msk [vmem:[%s1867_s7 + $0x18] sm:$0xff] %vm1298_vm4, %v1275_v31  ;;  %v1270_v33 = vadd.f32 %v1807_v23, %v1269_v32 }
 0x905   :  { %v1479_v34 = vpop.f32.mrf.mxu0 }
 0x906   :  { %1301 = vst.msk [vmem:[%s1867_s7 + $0x10] sm:$0xff] %vm1298_vm4, %v1270_v33  ;;  %v1285_v35 = vadd.f32 %v1479_v34, %v1807_v23 }
 0x907   :  { %v1279_v36 = vpop.f32.mrf.mxu0 }
 0x908   :  { %1304 = vst.msk [vmem:[%s1867_s7 + $0x28] sm:$0xff] %vm1298_vm4, %v1285_v35  ;;  %v1280_v37 = vadd.f32 %v1807_v23, %v1279_v36 }
 0x90a   :  { %1303 = vst.msk [vmem:[%s1867_s7 + $0x20] sm:$0xff] %vm1298_vm4, %v1280_v37 }
 0x90b   :  { %v1551_v41 = vpop.eup %1550 }
 0x90c   :  { %v1009_v42 = vadd.f32 1.0, %v1551_v41 }
 0x90e   :  { %1552 = vrcp.f32 %v1009_v42 }
 0x91b   :  { %v1553_v48 = vpop.eup %1552 }
 0x96c   :  { %v1016_v44 = vpop.permute.xlu0 %1015 }
 0x96d   :  { %v1018_v45 = vadd.f32 %v1016_v44, %v1013_v43 }
 0x96f   :  { %v1341_v46 = vmul.f32 -1.442695, %v1018_v45 }
 0x970   :  { %v1030_v47 = vpop.permute.xlu0 %1029 }
 0x971   :  { %1554 = vpow2.f32 %v1341_v46  ;;  %v1032_v49 = vmul.f32 %v1553_v48, %v1030_v47 }
 0x973   :  { %v1033_v53 = vadd.f32 %v1032_v49, %v1026_v51 }
 0x97e   :  { %v1555_v50 = vpop.eup %1554 }
 0x97f   :  { %v1022_v52 = vadd.f32 1.0, %v1555_v50 }
 0x981   :  { %1556 = vrcp.f32 %v1022_v52 }
 0x982   :  { %1558 = vtanh.f32 %v1033_v53 }
 0x98e   :  { %v1557_v54 = vpop.eup %1556 }
 0x98f   :  { %v1035_v55 = vsub.f32 1.0, %v1557_v54  ;;  %v1559_v6 = vpop.eup %1558  ;;  %v1037_v57 = vmul.f32 %v1557_v54, %v1788_v13  ;;  %v1137_v13 = vld [vmem:[#allocation4 + $0x38] sm:$0xff] }
 0x991   :  { %v1036_v56 = vmul.f32 %v1559_v6, %v1035_v55 }
 0x993   :  { %v1038_v9 = vadd.f32 %v1037_v57, %v1036_v56 }
 0x995   :  { %1040 = vst.msk [vmem:[#allocation5 + $0x30] sm:$0xff] %vm176_vm3, %v1038_v9  ;;  %1465 = vmatmul.mubr.msk.f32.vlgmr.msra.gmra.mxu1 %vm176_vm3, %v1038_v9 }
 0x99c   :  { %v1158_v58 = vld [vmem:[#allocation5 + $0x30] sm:$0xff] }
 0x99d   :  { %1480 = vmatprep.mubr.msk.f32.mxu0 %vm176_vm3, %v1158_v58 }
 0xa55   :  { %v1110_v12 = vpop.f32.mrf.mxu1 }
 0xa56   :  { %1126 = vrot.lane.b32.xlu0 %v1110_v12, %s1573_s3  ;;  %v1138_v60 = vadd.f32 %v1110_v12, %v1692_v25  ;;  %v1116_v62 = vadd.f32 %v1115_v61, %v1110_v12 }
 0xa57   :  { %v1466_v59 = vpop.f32.mrf.mxu1 }
 0xa58   :  { %v1343_v63 = vmul.f32 -1.442695, %v1116_v62 }
 0xa5a   :  { %1140 = vrot.lane.b32.xlu0 %v1138_v60, %s1574_s24  ;;  %1560 = vpow2.f32 %v1343_v63 }
 0xa67   :  { %v1561_v0 = vpop.eup %1560 }
 0xa68   :  { %v1120_v1 = vadd.f32 1.0, %v1561_v0 }
 0xa6a   :  { %1562 = vrcp.f32 %v1120_v1 }
 0xa77   :  { %v1563_v8 = vpop.eup %1562 }
 0xac8   :  { %v1127_v3 = vpop.permute.xlu0 %1126 }
 0xac9   :  { %v1129_v4 = vadd.f32 %v1127_v3, %v1124_v2 }
 0xacb   :  { %v1344_v5 = vmul.f32 -1.442695, %v1129_v4 }
 0xacc   :  { %v1141_v7 = vpop.permute.xlu0 %1140 }
 0xacd   :  { %1564 = vpow2.f32 %v1344_v5  ;;  %v1143_v10 = vmul.f32 %v1563_v8, %v1141_v7 }
 0xacf   :  { %v1144_v14 = vadd.f32 %v1143_v10, %v1137_v13 }
 0xada   :  { %v1565_v11 = vpop.eup %1564 }
 0xadb   :  { %v1133_v25 = vadd.f32 1.0, %v1565_v11 }
 0xadd   :  { %1566 = vrcp.f32 %v1133_v25 }
 0xade   :  { %1568 = vtanh.f32 %v1144_v14 }
 0xaea   :  { %v1567_v15 = vpop.eup %1566 }
 0xaeb   :  { %v1146_v16 = vsub.f32 1.0, %v1567_v15  ;;  %v1569_v17 = vpop.eup %1568  ;;  %v1148_v18 = vmul.f32 %v1567_v15, %v1038_v9 }
 0xaed   :  { %v1147_v19 = vmul.f32 %v1569_v17, %v1146_v16 }
 0xaef   :  { %v1149_v20 = vadd.f32 %v1148_v18, %v1147_v19 }
 0xaf1   :  { %1151 = vst.msk [vmem:[#allocation5 + $0x38] sm:$0xff] %vm176_vm3, %v1149_v20 }
 0xaf8   :  { %v1159_v21 = vld [vmem:[#allocation5 + $0x38] sm:$0xff] }
 0xaf9   :  { %1481 = vmatmul.mubr.msk.f32.gmra.mxu0 %vm176_vm3, %v1159_v21 }
 0xbb9   :  { %v1482_v22 = vpop.f32.mrf.mxu0 }
 0xbba   :  { %v1295_v24 = vadd.f32 %v1482_v22, %v1807_v23 }
 0xbbb   :  { %v1289_v26 = vpop.f32.mrf.mxu0 }
 0xbbc   :  { %1306 = vst.msk [vmem:[%s1867_s7 + $0x38] sm:$0xff] %vm1298_vm4, %v1295_v24  ;;  %v1290_v27 = vadd.f32 %v1807_v23, %v1289_v26 }
 0xbbe   :  { %1305 = vst.msk [vmem:[%s1867_s7 + $0x30] sm:$0xff] %vm1298_vm4, %v1290_v27 }

</bundles_post_ra>
